<compile_context>
chip_gen: v5e
topology: v5e:2x2
jax: 0.10.0
libtpu: 0.0.40
codegen_flags: <defaults>
</compile_context>

<pallas_src>
import functools

import jax
import jax.numpy as jnp
from jax import lax
from jax.experimental import pallas as pl
from jax.experimental.pallas import tpu as pltpu


def _round_up(x: int, m: int) -> int:
    return ((x + m - 1) // m) * m


def _mlp_kernel(x_ref, w0t_ref, b0_ref, w1t_ref, b1_ref, w2_ref, b2_ref, o_ref):
    """Fused 3-layer MLP; batch lives on the lane axis of intermediates/output.

    x_ref  : (Tb, D_in) f32   batch tile in natural row-major layout
    w0t_ref: (H0, D_in) f32
    b0_ref : (H0, 1)    f32
    w1t_ref: (H1, H0)   f32
    b1_ref : (H1, 1)    f32
    w2_ref : (H1, 1)    f32    (output_size == 1)
    b2_ref : (1, 1)     f32    # TODO(synk): could live in SMEM; resident anyway
    o_ref  : (1, Tb)    f32    lane-dense output tile
    """
    tb = x_ref.shape[0]

    # Lane-chunk the batch tile so one chunk's h0/h1 stay within the 64 vregs
    # (a full-width (H0, 16K) f32 temp would spill to VMEM and saturate vld/vst).
    lc = 128
    for c in (512, 256, 128):
        if tb % c == 0:
            lc = min(c, tb)
            break
    n_chunks = tb // lc

    # Resident weights / biases: load once per grid step, reuse across chunks.
    w0t = w0t_ref[...]
    b0 = b0_ref[...]
    w1t = w1t_ref[...]
    b1 = b1_ref[...]
    w2 = w2_ref[...]
    b2 = b2_ref[...]

    def chunk(ci, carry):
        off = pl.multiple_of(ci * lc, lc)
        xc = x_ref[pl.ds(off, lc), :]                                  # (lc, D_in)
        # Layer 0: contract over D_in -> (H0, lc); batch stays on lanes.
        h0 = lax.dot_general(w0t, xc, (((1,), (1,)), ((), ())),
                             preferred_element_type=jnp.float32)
        h0 = jnp.maximum(h0 + b0, 0.0)
        # Layer 1: (H1, H0) x (H0, lc) -> (H1, lc).
        h1 = jnp.dot(w1t, h0, preferred_element_type=jnp.float32)
        h1 = jnp.maximum(h1 + b1, 0.0)
        # Layer 2 (H1 -> 1): off the MXU — VPU multiply + sublane reduce.
        out = jnp.sum(h1 * w2, axis=0, keepdims=True) + b2             # (1, lc)
        o_ref[:, pl.ds(off, lc)] = out.astype(o_ref.dtype)
        return carry

    if n_chunks == 1:
        chunk(0, 0)
    else:
        lax.fori_loop(0, n_chunks, chunk, 0, unroll=True)


def prepare_prediction_layer_params(params):
    """One-time layout work (do at init / param-load time, not per call):
    transpose hidden-layer weights so batch stays on lanes in the kernel,
    reshape biases to column vectors, keep everything f32."""
    (w0, b0), (w1, b1), (w2, b2) = params
    return (
        jnp.asarray(w0.T, jnp.float32),               # (H0, D_in)
        jnp.asarray(b0.reshape(-1, 1), jnp.float32),  # (H0, 1)
        jnp.asarray(w1.T, jnp.float32),               # (H1, H0)
        jnp.asarray(b1.reshape(-1, 1), jnp.float32),  # (H1, 1)
        jnp.asarray(w2, jnp.float32),                 # (H1, 1)
        jnp.asarray(b2.reshape(1, 1), jnp.float32),   # (1, 1)
    )


@functools.partial(jax.jit, static_argnames=("tile_b",))
def prediction_layer_forward(x, w0t, b0c, w1t, b1c, w2c, b2c, *, tile_b=16384):
    """Fused Pallas forward.

    x : (B, D_in) f32 (natural layout); prepared params from
    prepare_prediction_layer_params.  Returns (B, 1) f32 logits (no sigmoid,
    matching PredictionLayer.forward).
    """
    B, D_in = x.shape
    H0 = w0t.shape[0]
    H1 = w1t.shape[0]
    assert w0t.shape == (H0, D_in)
    assert w1t.shape == (H1, H0)
    assert w2c.shape == (H1, 1), "PredictionLayer output_size is 1"

    # Batch tiling: 128-aligned, large enough to amortize per-grid-step
    # pipeline overhead, but re-balanced against ceil(B/128) so a mid-size
    # batch never gets padded up to a huge tile.
    tile_b = max(128, _round_up(tile_b, 128))
    padded_B0 = _round_up(B, 128)
    n_tiles = pl.cdiv(padded_B0, tile_b)
    tile_b_eff = _round_up(pl.cdiv(padded_B0, n_tiles), 128)
    padded_B = n_tiles * tile_b_eff
    # NOTE(v7x): for dual-TensorCore chips pass tile_b <= ceil(B/2) so
    # n_tiles >= 2 and the "parallel" batch axis spans both cores.

    x_p = x if padded_B == B else jnp.pad(x, ((0, padded_B - B), (0, 0)))

    in_specs = [
        pl.BlockSpec((tile_b_eff, D_in), lambda i: (i, 0)),   # x, batch-tiled
        pl.BlockSpec((H0, D_in), lambda i: (0, 0)),           # w0^T (resident)
        pl.BlockSpec((H0, 1), lambda i: (0, 0)),              # b0
        pl.BlockSpec((H1, H0), lambda i: (0, 0)),             # w1^T
        pl.BlockSpec((H1, 1), lambda i: (0, 0)),              # b1
        pl.BlockSpec((H1, 1), lambda i: (0, 0)),              # w2 column
        pl.BlockSpec((1, 1), lambda i: (0, 0)),               # b2
    ]
    out_specs = pl.BlockSpec((1, tile_b_eff), lambda i: (0, i))  # lane-dense

    flops = 2 * padded_B * (D_in * H0 + H0 * H1 + H1)
    bytes_accessed = 4 * (padded_B * D_in + padded_B
                          + D_in * H0 + H0 + H0 * H1 + H1 + H1 + 1)

    out_t = pl.pallas_call(
        _mlp_kernel,
        out_shape=jax.ShapeDtypeStruct((1, padded_B), jnp.float32),
        grid_spec=pltpu.PrefetchScalarGridSpec(
            num_scalar_prefetch=0,
            grid=(n_tiles,),
            in_specs=in_specs,
            out_specs=out_specs,
        ),
        compiler_params=pltpu.CompilerParams(
            dimension_semantics=("parallel",),
        ),
        cost_estimate=pl.CostEstimate(
            flops=flops, transcendentals=0, bytes_accessed=bytes_accessed),
    )(x_p, w0t, b0c, w1t, b1c, w2c, b2c)

    return out_t[:, :B].T  # (B, 1)


def init_prediction_layer_params(key, input_size, hidden_sizes, output_size=1):
    """Deterministic init mimicking nn.Linear's uniform(-1/sqrt(fan_in), +)."""
    params = []
    sizes = [input_size] + list(hidden_sizes) + [output_size]
    for i in range(len(sizes) - 1):
        fan_in, fan_out = sizes[i], sizes[i + 1]
        key, kw, kb = jax.random.split(key, 3)
        bound = 1.0 / jnp.sqrt(jnp.float32(fan_in))
        w = jax.random.uniform(kw, (fan_in, fan_out), jnp.float32, -bound, bound)
        b = jax.random.uniform(kb, (1, fan_out), jnp.float32, -bound, bound)
        params.append((w, b))
    return params


def reference_forward_f32(x, params):
    """Pure-JAX f32 reference of the PyTorch MLP forward."""
    h = x
    n = len(params)
    for i, (w, b) in enumerate(params):
        h = h @ w + b
        if i < n - 1:
            h = jnp.maximum(h, 0.0)
    return h


if __name__ == "__main__":
    # Module config (interaction_type='cat'):
    dense_out_size = 8
    sparse_out_sizes = [4, 4]
    concat_size = sum(sparse_out_sizes) + dense_out_size      # 16
    input_size = concat_size                                   # 'cat' branch
    hidden_sizes = [32, 16]

    batch = 16
    key = jax.random.PRNGKey(0)
    key, kx = jax.random.split(key)
    x = jax.random.normal(kx, (batch, input_size), jnp.float32)

    params = init_prediction_layer_params(key, input_size, hidden_sizes, 1)
    prepared = prepare_prediction_layer_params(params)

    out = prediction_layer_forward(x, *prepared)
    out = jax.block_until_ready(out)
    assert out.shape == (batch, 1)

    # Full-precision semantic check against the PyTorch-equivalent forward.
    ref = reference_forward_f32(x, params)
    assert jnp.allclose(out, ref, atol=1e-4, rtol=1e-4), \
        "mismatch vs f32 reference"

    print("KERNEL_OK")
</pallas_src>

<mosaic_0001>
module attributes {stable_mosaic.version = 11 : i64} {
  func.func @_mlp_kernel(%arg0: i32, %arg1: memref<128x16xf32, #tpu.memory_space<vmem>>, %arg2: memref<32x16xf32, #tpu.memory_space<vmem>>, %arg3: memref<32x1xf32, #tpu.memory_space<vmem>>, %arg4: memref<16x32xf32, #tpu.memory_space<vmem>>, %arg5: memref<16x1xf32, #tpu.memory_space<vmem>>, %arg6: memref<16x1xf32, #tpu.memory_space<vmem>>, %arg7: memref<1x1xf32, #tpu.memory_space<vmem>>, %arg8: memref<1x128xf32, #tpu.memory_space<vmem>>) attributes {dimension_semantics = [#tpu.dimension_semantics<parallel>], iteration_bounds = array<i64: 1>, scalar_prefetch = 0 : i64, scratch_operands = 0 : i64, tpu.core_type = #tpu.core_type<tc>, window_params = [{transform_indices = @transform_0, window_bounds = array<i64: 128, 16>}, {pipeline_mode = #tpu.pipeline_mode<synchronous>, transform_indices = @transform_1, window_bounds = array<i64: 32, 16>}, {pipeline_mode = #tpu.pipeline_mode<synchronous>, transform_indices = @transform_2, window_bounds = array<i64: 32, 1>}, {pipeline_mode = #tpu.pipeline_mode<synchronous>, transform_indices = @transform_3, window_bounds = array<i64: 16, 32>}, {pipeline_mode = #tpu.pipeline_mode<synchronous>, transform_indices = @transform_4, window_bounds = array<i64: 16, 1>}, {pipeline_mode = #tpu.pipeline_mode<synchronous>, transform_indices = @transform_5, window_bounds = array<i64: 16, 1>}, {pipeline_mode = #tpu.pipeline_mode<synchronous>, transform_indices = @transform_6, window_bounds = array<i64: 1, 1>}, {transform_indices = @transform_7, window_bounds = array<i64: 1, 128>}]} {
    %c0 = arith.constant 0 : index
    %c0_0 = arith.constant 0 : index
    %0 = vector.load %arg2[%c0, %c0_0] : memref<32x16xf32, #tpu.memory_space<vmem>>, vector<32x16xf32>
    %c0_1 = arith.constant 0 : index
    %c0_2 = arith.constant 0 : index
    %1 = vector.load %arg3[%c0_1, %c0_2] : memref<32x1xf32, #tpu.memory_space<vmem>>, vector<32x1xf32>
    %c0_3 = arith.constant 0 : index
    %c0_4 = arith.constant 0 : index
    %2 = vector.load %arg4[%c0_3, %c0_4] : memref<16x32xf32, #tpu.memory_space<vmem>>, vector<16x32xf32>
    %c0_5 = arith.constant 0 : index
    %c0_6 = arith.constant 0 : index
    %3 = vector.load %arg5[%c0_5, %c0_6] : memref<16x1xf32, #tpu.memory_space<vmem>>, vector<16x1xf32>
    %c0_7 = arith.constant 0 : index
    %c0_8 = arith.constant 0 : index
    %4 = vector.load %arg6[%c0_7, %c0_8] : memref<16x1xf32, #tpu.memory_space<vmem>>, vector<16x1xf32>
    %c0_9 = arith.constant 0 : index
    %c0_10 = arith.constant 0 : index
    %5 = vector.load %arg7[%c0_9, %c0_10] : memref<1x1xf32, #tpu.memory_space<vmem>>, vector<1x1xf32>
    %c0_i32 = arith.constant 0 : i32
    %6 = tpu.assume_multiple %c0_i32, 128 : i32
    %7 = arith.index_cast %6 : i32 to index
    %c0_11 = arith.constant 0 : index
    %8 = vector.load %arg1[%7, %c0_11] : memref<128x16xf32, #tpu.memory_space<vmem>>, vector<128x16xf32>
    %cst = arith.constant dense<0.000000e+00> : vector<32x128xf32>
    %9 = tpu.matmul %0, %8, %cst {dimension_numbers = #tpu.dot_dimension_numbers<[1], [1], [0], [0], [0, 0, 1, 0], [], []>} : vector<32x16xf32>, vector<128x16xf32>, vector<32x128xf32> -> vector<32x128xf32>
    %10 = vector.broadcast %1 : vector<32x1xf32> to vector<32x128xf32>
    %11 = arith.addf %9, %10 : vector<32x128xf32>
    %cst_12 = arith.constant 0.000000e+00 : f32
    %12 = vector.broadcast %cst_12 : f32 to vector<32x128xf32>
    %13 = arith.maximumf %11, %12 : vector<32x128xf32>
    %cst_13 = arith.constant dense<0.000000e+00> : vector<16x128xf32>
    %14 = tpu.matmul %2, %13, %cst_13 {dimension_numbers = #tpu.dot_dimension_numbers<[1], [0], [0], [1], [0, 0, 1, 1], [], []>} : vector<16x32xf32>, vector<32x128xf32>, vector<16x128xf32> -> vector<16x128xf32>
    %15 = vector.broadcast %3 : vector<16x1xf32> to vector<16x128xf32>
    %16 = arith.addf %14, %15 : vector<16x128xf32>
    %cst_14 = arith.constant 0.000000e+00 : f32
    %17 = vector.broadcast %cst_14 : f32 to vector<16x128xf32>
    %18 = arith.maximumf %16, %17 : vector<16x128xf32>
    %19 = vector.broadcast %4 : vector<16x1xf32> to vector<16x128xf32>
    %20 = arith.mulf %18, %19 : vector<16x128xf32>
    %cst_15 = arith.constant dense<0.000000e+00> : vector<128xf32>
    %21 = vector.multi_reduction <add>, %20, %cst_15 [0] : vector<16x128xf32> to vector<128xf32>
    %22 = vector.shape_cast %21 : vector<128xf32> to vector<1x128xf32>
    %23 = vector.broadcast %5 : vector<1x1xf32> to vector<1x128xf32>
    %24 = arith.addf %22, %23 : vector<1x128xf32>
    %c0_16 = arith.constant 0 : index
    %25 = arith.index_cast %6 : i32 to index
    %26 = vector.load %arg8[%c0_16, %25] : memref<1x128xf32, #tpu.memory_space<vmem>>, vector<1x128xf32>
    tpu.vector_store %arg8[%c0_16, %25], %24 {strides = array<i32>} : memref<1x128xf32, #tpu.memory_space<vmem>>, vector<1x128xf32>,
    return
  }
  func.func @transform_0(%arg0: i32) -> (i32, i32) {
    %c0_i32 = arith.constant 0 : i32
    %c0_i32_0 = arith.constant 0 : i32
    return %arg0, %c0_i32 : i32, i32
  }
  func.func @transform_1(%arg0: i32) -> (i32, i32) {
    %c0_i32 = arith.constant 0 : i32
    %c0_i32_0 = arith.constant 0 : i32
    %c0_i32_1 = arith.constant 0 : i32
    return %c0_i32, %c0_i32_0 : i32, i32
  }
  func.func @transform_2(%arg0: i32) -> (i32, i32) {
    %c0_i32 = arith.constant 0 : i32
    %c0_i32_0 = arith.constant 0 : i32
    %c0_i32_1 = arith.constant 0 : i32
    return %c0_i32, %c0_i32_0 : i32, i32
  }
  func.func @transform_3(%arg0: i32) -> (i32, i32) {
    %c0_i32 = arith.constant 0 : i32
    %c0_i32_0 = arith.constant 0 : i32
    %c0_i32_1 = arith.constant 0 : i32
    return %c0_i32, %c0_i32_0 : i32, i32
  }
  func.func @transform_4(%arg0: i32) -> (i32, i32) {
    %c0_i32 = arith.constant 0 : i32
    %c0_i32_0 = arith.constant 0 : i32
    %c0_i32_1 = arith.constant 0 : i32
    return %c0_i32, %c0_i32_0 : i32, i32
  }
  func.func @transform_5(%arg0: i32) -> (i32, i32) {
    %c0_i32 = arith.constant 0 : i32
    %c0_i32_0 = arith.constant 0 : i32
    %c0_i32_1 = arith.constant 0 : i32
    return %c0_i32, %c0_i32_0 : i32, i32
  }
  func.func @transform_6(%arg0: i32) -> (i32, i32) {
    %c0_i32 = arith.constant 0 : i32
    %c0_i32_0 = arith.constant 0 : i32
    %c0_i32_1 = arith.constant 0 : i32
    return %c0_i32, %c0_i32_0 : i32, i32
  }
  func.func @transform_7(%arg0: i32) -> (i32, i32) {
    %c0_i32 = arith.constant 0 : i32
    %c0_i32_0 = arith.constant 0 : i32
    return %c0_i32, %arg0 : i32, i32
  }
}

</mosaic_0001>

<bundles_post_ra>
// kernel: prediction_layer_forward.1
= control target key start
LH: loop header
LB: loop body
LE: loop exit
PB: predicated region body
PF: predicated region fallthrough
CT: control target
= control target key end

     0   :  { %vm79_vm0 = vcmask 130048   ;;  %v304_v12 = vmov 0   ;;  %vm183_vm1 = vcmask 261120   ;;  %s493_s0 = inlined_call_operand.vmem [shape: f32[128,16], index: 0, kind: input, shape index: {}]   ;;  %s494_s2 = inlined_call_operand.vmem [shape: f32[32,1], index: 2, kind: input, shape index: {}]   ;;  %s495_s5 = inlined_call_operand.vmem [shape: f32[16,1], index: 5, kind: input, shape index: {}]   ;;  %s496_s1 = inlined_call_operand.vmem [shape: f32[32,16], index: 1, kind: input, shape index: {}]   ;;  %s497_s4 = inlined_call_operand.vmem [shape: f32[16,1], index: 4, kind: input, shape index: {}]   ;;  %s498_s6 = inlined_call_operand.<no memory space> [shape: f32[1,1], index: 6, kind: input, shape index: {}]   ;;  %s499_s3 = inlined_call_operand.vmem [shape: f32[16,32], index: 3, kind: input, shape index: {}]   ;;  %s500_s7 = inlined_call_operand.vmem [shape: f32[1,128], index: 7, kind: output, shape index: {}]  }
   0x1   :  { %v58_v0 = vld [vmem:[%s493_s0 + $0x78] sm:$0xff]  ;;  %v57_v1 = vld [vmem:[%s493_s0 + $0x70] sm:$0xff]  ;;  %v56_v2 = vld [vmem:[%s493_s0 + $0x68] sm:$0xff]  ;;  %301 = vset.pattern.permute.xlu0 %v304_v12  ;;  %302 = vset.pattern.permute.xlu1 %v304_v12  ;;  %v12_v28 = vstv %s498_s6 }
   0x2   :  { %269 = vmatpush.xpose.msk.msra.mxu3 %vm79_vm0, %v58_v0  ;;  %268 = vmatpush.xpose.msk.msra.mxu2 %vm79_vm0, %v58_v0  ;;  %v55_v3 = vld [vmem:[%s493_s0 + $0x60] sm:$0xff]  ;;  %v54_v4 = vld [vmem:[%s493_s0 + $0x58] sm:$0xff]  ;;  %v53_v5 = vld [vmem:[%s493_s0 + $0x50] sm:$0xff]  ;;  %13 = vst [vmem:[#allocation2] sm:$0x1] %v12_v28 }
   0x3   :  { %246 = vmatpush.xpose.msk.msra.mxu0 %vm79_vm0, %v58_v0  ;;  %v52_v6 = vld [vmem:[%s493_s0 + $0x48] sm:$0xff]  ;;  %v51_v7 = vld [vmem:[%s493_s0 + $0x40] sm:$0xff]  ;;  %v50_v8 = vld [vmem:[%s493_s0 + $0x38] sm:$0xff]  ;;  %303 = vset.pattern.permute.xlu2 %v304_v12 }
   0x4   :  { %v35_v9 = vld [vmem:[%s494_s2 + $0x18] sm:$0xff]  ;;  %v33_v10 = vld [vmem:[%s494_s2 + $0x8] sm:$0xff]  ;;  %v49_v11 = vld [vmem:[%s493_s0 + $0x30] sm:$0xff] }
   0x5   :  { %76 = vperm.xlu0 %301, %v35_v9   ;;  %66 = vperm.xlu1 %302, %v33_v10   ;;  %v48_v13 = vld [vmem:[%s493_s0 + $0x28] sm:$0xff]  ;;  %v34_v14 = vld [vmem:[%s494_s2 + $0x10] sm:$0xff]  ;;  %v32_v15 = vld [vmem:[%s494_s2] sm:$0xff] }
   0x6   :  { %271 = vmatpush.xpose.msk.msra.mxu3 %vm79_vm0, %v57_v1  ;;  %270 = vmatpush.xpose.msk.msra.mxu2 %vm79_vm0, %v57_v1  ;;  %v47_v16 = vld [vmem:[%s493_s0 + $0x20] sm:$0xff]  ;;  %v46_v17 = vld [vmem:[%s493_s0 + $0x18] sm:$0xff]  ;;  %v41_v19 = vld [vmem:[%s495_s5 + $0x8] sm:$0xff] }
   0x7   :  { %247 = vmatpush.xpose.msk.msra.mxu0 %vm79_vm0, %v57_v1  ;;  %v40_v18 = vld [vmem:[%s495_s5] sm:$0xff]  ;;  %v45_v20 = vld [vmem:[%s493_s0 + $0x10] sm:$0xff]  ;;  %v44_v21 = vld [vmem:[%s493_s0 + $0x8] sm:$0xff] }
   0x8   :  { %v43_v22 = vld [vmem:[%s493_s0] sm:$0xff]  ;;  %v30_v23 = vld [vmem:[%s496_s1 + $0x10] sm:$0xff]  ;;  %v29_v24 = vld [vmem:[%s496_s1 + $0x8] sm:$0xff] }
   0x9   :  { %v28_v25 = vld [vmem:[%s496_s1] sm:$0xff]  ;;  %v31_v26 = vld [vmem:[%s496_s1 + $0x18] sm:$0xff]  ;;  %v39_v32 = vld [vmem:[%s497_s4 + $0x8] sm:$0xff] }
   0xa   :  { %273 = vmatpush.xpose.msk.msra.mxu3 %vm79_vm0, %v56_v2  ;;  %272 = vmatpush.xpose.msk.msra.mxu2 %vm79_vm0, %v56_v2  ;;  %v38_v27 = vld [vmem:[%s497_s4] sm:$0xff]  ;;  %v37_v48 = vld [vmem:[%s499_s3 + $0x8] sm:$0xff] }
   0xb   :  { %248 = vmatpush.xpose.msk.msra.mxu0 %vm79_vm0, %v56_v2  ;;  %175 = vperm.xlu2 %303, %v38_v27   ;;  %v42_v39 = vld [vmem:[#allocation2] sm:$0x1] }
   0xc   :  { %v36_v47 = vld [vmem:[%s499_s3] sm:$0xff] }
   0xd   :  { %71 = vperm.xlu0 %301, %v34_v14   ;;  %61 = vperm.xlu1 %302, %v32_v15  }
   0xe   :  { %275 = vmatpush.xpose.msk.msra.mxu3 %vm79_vm0, %v55_v3  ;;  %274 = vmatpush.xpose.msk.msra.mxu2 %vm79_vm0, %v55_v3 }
   0xf   :  { %249 = vmatpush.xpose.msk.msra.mxu0 %vm79_vm0, %v55_v3 }
  0x12   :  { %277 = vmatpush.xpose.msk.msra.mxu3 %vm79_vm0, %v54_v4  ;;  %276 = vmatpush.xpose.msk.msra.mxu2 %vm79_vm0, %v54_v4 }
  0x13   :  { %250 = vmatpush.xpose.msk.msra.mxu0 %vm79_vm0, %v54_v4  ;;  %180 = vperm.xlu2 %303, %v39_v32  }
  0x15   :  { %217 = vperm.xlu0 %301, %v40_v18   ;;  %222 = vperm.xlu1 %302, %v41_v19  }
  0x16   :  { %279 = vmatpush.xpose.msk.msra.mxu3 %vm79_vm0, %v53_v5  ;;  %278 = vmatpush.xpose.msk.msra.mxu2 %vm79_vm0, %v53_v5 }
  0x17   :  { %251 = vmatpush.xpose.msk.msra.mxu0 %vm79_vm0, %v53_v5 }
  0x1a   :  { %281 = vmatpush.xpose.msk.msra.mxu3 %vm79_vm0, %v52_v6  ;;  %280 = vmatpush.xpose.msk.msra.mxu2 %vm79_vm0, %v52_v6 }
  0x1b   :  { %252 = vmatpush.xpose.msk.msra.mxu0 %vm79_vm0, %v52_v6  ;;  %236 = vperm.xlu2 %303, %v42_v39  }
  0x1e   :  { %283 = vmatpush.xpose.msk.msra.mxu3 %vm79_vm0, %v51_v7  ;;  %282 = vmatpush.xpose.msk.msra.mxu2 %vm79_vm0, %v51_v7 }
  0x1f   :  { %253 = vmatpush.xpose.msk.msra.mxu0 %vm79_vm0, %v51_v7 }
  0x22   :  { %285 = vmatpush.xpose.msk.msra.mxu3 %vm79_vm0, %v50_v8  ;;  %284 = vmatpush.xpose.msk.msra.mxu2 %vm79_vm0, %v50_v8 }
  0x23   :  { %254 = vmatpush.xpose.msk.msra.mxu0 %vm79_vm0, %v50_v8 }
  0x26   :  { %287 = vmatpush.xpose.msk.msra.mxu3 %vm79_vm0, %v49_v11  ;;  %286 = vmatpush.xpose.msk.msra.mxu2 %vm79_vm0, %v49_v11 }
  0x27   :  { %255 = vmatpush.xpose.msk.msra.mxu0 %vm79_vm0, %v49_v11 }
  0x2a   :  { %289 = vmatpush.xpose.msk.msra.mxu3 %vm79_vm0, %v48_v13  ;;  %288 = vmatpush.xpose.msk.msra.mxu2 %vm79_vm0, %v48_v13 }
  0x2b   :  { %256 = vmatpush.xpose.msk.msra.mxu0 %vm79_vm0, %v48_v13 }
  0x2e   :  { %291 = vmatpush.xpose.msk.msra.mxu3 %vm79_vm0, %v47_v16  ;;  %290 = vmatpush.xpose.msk.msra.mxu2 %vm79_vm0, %v47_v16 }
  0x2f   :  { %257 = vmatpush.xpose.msk.msra.mxu0 %vm79_vm0, %v47_v16 }
  0x32   :  { %293 = vmatpush.xpose.msk.msra.mxu3 %vm79_vm0, %v46_v17  ;;  %292 = vmatpush.xpose.msk.msra.mxu2 %vm79_vm0, %v46_v17 }
  0x33   :  { %258 = vmatpush.xpose.msk.msra.mxu0 %vm79_vm0, %v46_v17 }
  0x36   :  { %295 = vmatpush.xpose.msk.msra.mxu3 %vm79_vm0, %v45_v20  ;;  %294 = vmatpush.xpose.msk.msra.mxu2 %vm79_vm0, %v45_v20 }
  0x37   :  { %259 = vmatpush.xpose.msk.msra.mxu0 %vm79_vm0, %v45_v20 }
  0x3a   :  { %297 = vmatpush.xpose.msk.msra.mxu3 %vm79_vm0, %v44_v21  ;;  %296 = vmatpush.xpose.msk.msra.mxu2 %vm79_vm0, %v44_v21 }
  0x3b   :  { %260 = vmatpush.xpose.msk.msra.mxu0 %vm79_vm0, %v44_v21 }
  0x3e   :  { %299 = vmatpush.xpose.msk.msra.mxu3 %vm79_vm0, %v43_v22  ;;  %298 = vmatpush.xpose.msk.msra.mxu2 %vm79_vm0, %v43_v22 }
  0x3f   :  { %261 = vmatpush.xpose.msk.msra.mxu0 %vm79_vm0, %v43_v22 }
  0x41   :  { %264 = vmatmul.msk.f32.vlgmr.msra.gmra.mxu3 %vm79_vm0, %v30_v23  ;;  %263 = vmatmul.msk.f32.vlgmr.msra.gmra.mxu2 %vm79_vm0, %v29_v24 }
  0x42   :  { %262 = vmatmul.msk.f32.vlgmr.msra.gmra.mxu0 %vm79_vm0, %v28_v25 }
  0x49   :  { %265 = vmatmul.msk.f32.gmra.mxu3 %vm79_vm0, %v31_v26 }
  0x65   :  { %v176_v49 = vpop.permute.xlu2 %175 }
  0x6d   :  { %v181_v52 = vpop.permute.xlu2 %180 }
  0x75   :  { %v237_v2 = vpop.permute.xlu2 %236 }
  0x76   :  { %v239_v4 = vperm.slane %v237_v2, 0 }
  0x77   :  { %v77_v29 = vpop.permute.xlu0 %76  ;;  %v67_v31 = vpop.permute.xlu1 %66 }
  0x7f   :  { %v72_v33 = vpop.permute.xlu0 %71  ;;  %v62_v42 = vpop.permute.xlu1 %61 }
  0x87   :  { %v218_v57 = vpop.permute.xlu0 %217  ;;  %v223_v58 = vpop.permute.xlu1 %222 }
  0xbf   :  { %v157_v38 = vpop.f32.mrf.mxu0 }
  0xc0   :  { %v158_v44 = vadd.f32 %v157_v38, %v62_v42 }
  0xc2   :  { %v169_v46 = vmax.f32 %v158_v44, 0.0 }
  0xc4   :  { %v163_v30 = vpop.f32.mrf.mxu3  ;;  %v160_v34 = vpop.f32.mrf.mxu2 }
  0xc5   :  { %v164_v36 = vadd.f32 %v163_v30, %v72_v33  ;;  %v161_v40 = vadd.f32 %v160_v34, %v67_v31 }
  0xc7   :  { %v171_v43 = vmax.f32 %v164_v36, 0.0  ;;  %v170_v45 = vmax.f32 %v161_v40, 0.0 }
  0xcc   :  { %v166_v35 = vpop.f32.mrf.mxu3 }
  0xcd   :  { %v167_v37 = vadd.f32 %v166_v35, %v77_v29 }
  0xcf   :  { %v172_v41 = vmax.f32 %v167_v37, 0.0 }
  0xd1   :  { %202 = vmatpush.msra.mxu1 %v172_v41 }
  0xd3   :  { %203 = vmatpush.msra.mxu1 %v171_v43 }
  0xd5   :  { %204 = vmatpush.msra.mxu1 %v170_v45 }
  0xd7   :  { %205 = vmatpush.msra.mxu1 %v169_v46 }
  0xd8   :  { %266 = vmatmul.msk.f32.vlgmr.msra.gmra.mxu1 %vm183_vm1, %v36_v47 }
  0xe0   :  { %267 = vmatmul.msk.f32.gmra.mxu1 %vm183_vm1, %v37_v48 }
 0x155   :  { %v207_v50 = vpop.f32.mrf.mxu1 }
 0x156   :  { %v208_v51 = vadd.f32 %v207_v50, %v176_v49 }
 0x158   :  { %v213_v54 = vmax.f32 %v208_v51, 0.0 }
 0x15a   :  { %v225_v59 = vmul.f32 %v218_v57, %v213_v54 }
 0x15d   :  { %v210_v53 = vpop.f32.mrf.mxu1 }
 0x15e   :  { %v211_v55 = vadd.f32 %v210_v53, %v181_v52 }
 0x160   :  { %v214_v56 = vmax.f32 %v211_v55, 0.0 }
 0x162   :  { %v226_v60 = vmul.f32 %v223_v58, %v214_v56 }
 0x164   :  { %v227_v61 = vadd.f32 %v226_v60, %v225_v59 }
 0x166   :  { %v228_v62 = vrot.slane %v227_v61, 4 }
 0x168   :  { %v229_v63 = vadd.f32 %v228_v62, %v227_v61 }
 0x16a   :  { %v230_v0 = vrot.slane %v229_v63, 2 }
 0x16c   :  { %v231_v1 = vadd.f32 %v230_v0, %v229_v63 }
 0x16e   :  { %v232_v3 = vrot.slane %v231_v1, 1 }
 0x170   :  { %v233_v5 = vadd.f32 %v232_v3, %v231_v1 }
 0x172   :  { %v240_v6 = vadd.f32 %v239_v4, %v233_v5 }
 0x174   :  { %241 = vst [vmem:[%s500_s7] sm:$0x1] %v240_v6 }

</bundles_post_ra>
